<compile_context>
chip_gen: v6e
topology: v6e:2x2x1
jax: 0.10.0
libtpu: 0.0.40
codegen_flags: <defaults>
</compile_context>

<pallas_src>
import jax
import jax.numpy as jnp
from jax.experimental import pallas as pl
from jax.experimental.pallas import tpu as pltpu

NEG_SLOPE = 0.01  # PyTorch nn.LeakyReLU default


def _leaky_relu(x):
    return jnp.where(x > 0, x, NEG_SLOPE * x)


def _contri_kernel(x_ref, w1_ref, b1_ref, w2_ref, b2_ref, out_ref, emb_ref):
    # Layer 1: (TILE_N, H) @ (H, H) on the MXU with f32 accumulation.
    h = jnp.dot(x_ref[...], w1_ref[...], preferred_element_type=jnp.float32)
    h = _leaky_relu(h + b1_ref[...])          # (1, H) bias broadcast; f32 VPU
    emb_ref[...] = h.astype(emb_ref.dtype)    # single cast, contiguous (TILE_N, H) store

    # Layer 2 (hidden -> 1): VPU multiply by the w2 row + lane reduce (XLU).
    # Avoids a degenerate 1-output-column MXU matmul and any extra h cast.
    o = jnp.sum(h * w2_ref[...], axis=-1, keepdims=True) + b2_ref[0, 0]
    out_ref[...] = _leaky_relu(o).astype(out_ref.dtype)


def _round_down8(v):
    return max(8, (v // 8) * 8)


def _choose_tile_n(n, target_tile_n, hdim, compute_bytes, emb_bytes,
                   *, min_grid_steps=4, vmem_tile_budget=24 << 20):
    """Pick the row-tile size.

    - One block == full N when the problem fits a single target tile (always legal).
    - Otherwise a multiple of 8 (sublane), clamped so the grid keeps at least
      `min_grid_steps` steps (so the "parallel" axis can shard across v7x's 2 TCs)
      and the double-buffered x/emb tiles + resident weights fit the VMEM budget.
    """
    if n <= target_tile_n:
        return n
    tile = _round_down8(target_tile_n)
    # Keep >= min_grid_steps grid steps (megacore split + pipeline overlap).
    tile = min(tile, _round_down8(pl.cdiv(n, min_grid_steps)))
    # VMEM: double-buffered x tile + emb tile + out tile, plus resident W1/b1/w2/b2.
    per_row = 2 * hdim * (compute_bytes + emb_bytes) + 2 * 4
    resident = hdim * hdim * compute_bytes + 2 * hdim * 4 + 8
    avail = max(vmem_tile_budget - resident, 1 << 20)
    tile = min(tile, _round_down8(avail // per_row))
    return max(tile, 8)


def simple_contri_forward_pallas(x, w1, b1, w2, b2, *, target_tile_n=8192,
                                 compute_dtype=jnp.bfloat16, emb_dtype=None):
    """Pallas path.  x: (N, H); w1: (H, H); b1: (H,); w2: (H, 1); b2: (1,).
    Returns (out (N, 1) f32, contri_embs (N, H) emb_dtype)."""
    n, hdim = x.shape
    emb_dtype = compute_dtype if emb_dtype is None else emb_dtype
    csize = jnp.dtype(compute_dtype).itemsize
    esize = jnp.dtype(emb_dtype).itemsize

    # No transposes of the big arrays: natural (N, H) layout throughout.
    xc = x.astype(compute_dtype)                      # (N, H)
    w1c = w1.astype(compute_dtype)                    # (H, H), resident
    b1r = b1.reshape(1, hdim).astype(jnp.float32)     # (1, H), resident
    w2r = w2.reshape(1, hdim).astype(jnp.float32)     # (1, H) row, resident
    b2s = b2.reshape(1, 1).astype(jnp.float32)        # scalar via SMEM

    tn = _choose_tile_n(n, target_tile_n, hdim, csize, esize)
    grid = (pl.cdiv(n, tn),)

    # Honest cost estimate: no hidden wrapper passes over HBM anymore.
    cost = pl.CostEstimate(
        flops=2 * n * hdim * hdim + 2 * n * hdim,
        transcendentals=0,
        bytes_accessed=(n * hdim * csize              # x in
                        + hdim * hdim * csize         # W1
                        + 2 * hdim * 4 + 4            # b1, w2, b2
                        + n * hdim * esize            # emb out
                        + n * 4),                     # out
    )

    out, emb = pl.pallas_call(
        _contri_kernel,
        grid=grid,
        in_specs=[
            pl.BlockSpec((tn, hdim), lambda i: (i, 0)),        # x tile (pipelined)
            pl.BlockSpec((hdim, hdim), lambda i: (0, 0)),      # W1, resident
            pl.BlockSpec((1, hdim), lambda i: (0, 0)),         # b1 row, resident
            pl.BlockSpec((1, hdim), lambda i: (0, 0)),         # w2 row, resident
            pl.BlockSpec(memory_space=pltpu.MemorySpace.SMEM), # b2 scalar
        ],
        out_specs=(
            pl.BlockSpec((tn, 1), lambda i: (i, 0)),           # out tile
            pl.BlockSpec((tn, hdim), lambda i: (i, 0)),        # emb tile (contiguous)
        ),
        out_shape=(
            jax.ShapeDtypeStruct((n, 1), jnp.float32),
            jax.ShapeDtypeStruct((n, hdim), emb_dtype),
        ),
        compiler_params=pltpu.CompilerParams(
            dimension_semantics=("parallel",),    # shards across v7x's 2 TensorCores
            vmem_limit_bytes=32 * 1024 * 1024,    # explicit budget; fits v5e/v6e/v7x
        ),
        cost_estimate=cost,
    )(xc, w1c, b1r, w2r, b2s)

    return out, emb


def simple_contri_forward(x, w1, b1, w2, b2, *, target_tile_n=8192,
                          compute_dtype=jnp.bfloat16, emb_dtype=None,
                          min_pallas_rows=128):
    """Dispatch: tiny problems skip Pallas (launch/pipeline overhead dominates)."""
    n, _ = x.shape
    if n < min_pallas_rows:
        h = _leaky_relu(x @ w1 + b1)
        o = _leaky_relu(h @ w2 + b2)
        return o, h
    return simple_contri_forward_pallas(x, w1, b1, w2, b2,
                                        target_tile_n=target_tile_n,
                                        compute_dtype=compute_dtype,
                                        emb_dtype=emb_dtype)


def _reference(x, w1, b1, w2, b2, compute_dtype=jnp.float32):
    """Matches the kernel's numerics: layer-1 matmul in compute_dtype with f32
    accumulate; bias, activation and the hidden->1 projection in f32.
    Note: f32 jnp.dot uses default (reduced) MXU precision on TPU; pass
    precision=jax.lax.Precision.HIGHEST in both places if bit-faithful f32 is needed."""
    xc = x.astype(compute_dtype)
    w1c = w1.astype(compute_dtype)
    h = _leaky_relu(jnp.dot(xc, w1c, preferred_element_type=jnp.float32)
                    + b1.astype(jnp.float32))
    o = _leaky_relu(jnp.sum(h * w2.reshape(1, -1).astype(jnp.float32),
                            axis=-1, keepdims=True) + b2.astype(jnp.float32))
    return o, h


if __name__ == "__main__":
    hidden_dim = 32
    key = jax.random.PRNGKey(0)
    kx, k1, k2, k3, k4 = jax.random.split(key, 5)

    # Deterministic synthetic parameters (not a checkpoint load).
    w1 = jax.random.normal(k1, (hidden_dim, hidden_dim), jnp.float32) * 0.1
    b1 = jax.random.normal(k2, (hidden_dim,), jnp.float32) * 0.1
    w2 = jax.random.normal(k3, (hidden_dim, 1), jnp.float32) * 0.1
    b2 = jax.random.normal(k4, (1,), jnp.float32) * 0.1

    # 1) Module-sized input (N=8 snapshot readouts), Pallas path forced, f32 compute.
    x_small = jax.random.normal(kx, (8, hidden_dim), jnp.float32)
    out_s, emb_s = simple_contri_forward_pallas(
        x_small, w1, b1, w2, b2, compute_dtype=jnp.float32)
    out_s = jax.block_until_ready(out_s)
    emb_s = jax.block_until_ready(emb_s)
    ref_o, ref_h = _reference(x_small, w1, b1, w2, b2)
    assert out_s.shape == (8, 1) and emb_s.shape == (8, hidden_dim)
    assert jnp.allclose(out_s, ref_o, atol=1e-2, rtol=1e-2), "small out mismatch"
    assert jnp.allclose(emb_s, ref_h, atol=1e-2, rtol=1e-2), "small emb mismatch"

    # 2) Non-multiple N (300) with a small target tile: exercises multiple grid
    #    steps, the >=4-step clamp, and masked writeback of the padded last block.
    x_rag = jax.random.normal(kx, (300, hidden_dim), jnp.float32)
    out_r, emb_r = simple_contri_forward_pallas(
        x_rag, w1, b1, w2, b2, target_tile_n=128, compute_dtype=jnp.float32)
    out_r = jax.block_until_ready(out_r)
    emb_r = jax.block_until_ready(emb_r)
    ref_o, ref_h = _reference(x_rag, w1, b1, w2, b2)
    assert out_r.shape == (300, 1) and emb_r.shape == (300, hidden_dim)
    assert jnp.allclose(out_r, ref_o, atol=1e-2, rtol=1e-2), "ragged out mismatch"
    assert jnp.allclose(emb_r, ref_h, atol=1e-2, rtol=1e-2), "ragged emb mismatch"

    # 3) Default bf16 compute / bf16 emb writeback on a larger N (grid of 4 tiles).
    x_big = jax.random.normal(kx, (4096, hidden_dim), jnp.float32)
    out_bf, emb_bf = simple_contri_forward_pallas(
        x_big, w1, b1, w2, b2, target_tile_n=1024)   # bf16 defaults
    out_bf = jax.block_until_ready(out_bf)
    emb_bf = jax.block_until_ready(emb_bf)
    ref_o16, ref_h16 = _reference(x_big, w1, b1, w2, b2, compute_dtype=jnp.bfloat16)
    assert emb_bf.dtype == jnp.bfloat16 and out_bf.dtype == jnp.float32
    assert jnp.allclose(out_bf, ref_o16, atol=2e-2, rtol=2e-2), "bf16 out mismatch"
    assert jnp.allclose(emb_bf.astype(jnp.float32),
                        ref_h16.astype(jnp.bfloat16).astype(jnp.float32),
                        atol=2e-2, rtol=2e-2), "bf16 emb mismatch"

    # 4) Public wrapper: tiny N takes the plain-XLA fast path (no Pallas launch).
    out_w, emb_w = simple_contri_forward(x_small, w1, b1, w2, b2)
    out_w = jax.block_until_ready(out_w)
    assert jnp.allclose(out_w, out_s, atol=1e-2, rtol=1e-2)
    assert jnp.allclose(emb_w, emb_s, atol=1e-2, rtol=1e-2)

    # TODO(synk): nn.Dropout(p=0) is the identity and is elided; a p>0 training-mode
    # dropout would need pltpu.prng_seed/prng_random_bits inside the kernel.
    print("KERNEL_OK")
</pallas_src>

<mosaic_0001>
module attributes {stable_mosaic.version = 11 : i64} {
  func.func @_contri_kernel(%arg0: i32, %arg1: memref<8x32xf32, #tpu.memory_space<vmem>>, %arg2: memref<32x32xf32, #tpu.memory_space<vmem>>, %arg3: memref<1x32xf32, #tpu.memory_space<vmem>>, %arg4: memref<1x32xf32, #tpu.memory_space<vmem>>, %arg5: memref<1x1xf32, #tpu.memory_space<smem>>, %arg6: memref<8x1xf32, #tpu.memory_space<vmem>>, %arg7: memref<8x32xf32, #tpu.memory_space<vmem>>) attributes {dimension_semantics = [#tpu.dimension_semantics<parallel>], iteration_bounds = array<i64: 1>, scalar_prefetch = 0 : i64, scratch_operands = 0 : i64, tpu.core_type = #tpu.core_type<tc>, window_params = [{transform_indices = @transform_0, window_bounds = array<i64: 8, 32>}, {pipeline_mode = #tpu.pipeline_mode<synchronous>, transform_indices = @transform_1, window_bounds = array<i64: 32, 32>}, {pipeline_mode = #tpu.pipeline_mode<synchronous>, transform_indices = @transform_2, window_bounds = array<i64: 1, 32>}, {pipeline_mode = #tpu.pipeline_mode<synchronous>, transform_indices = @transform_3, window_bounds = array<i64: 1, 32>}, {transform_indices = @transform_4, window_bounds = array<i64: 1, 1>}, {transform_indices = @transform_5, window_bounds = array<i64: 8, 1>}, {transform_indices = @transform_6, window_bounds = array<i64: 8, 32>}]} {
    %c0 = arith.constant 0 : index
    %c0_0 = arith.constant 0 : index
    %0 = vector.load %arg1[%c0, %c0_0] : memref<8x32xf32, #tpu.memory_space<vmem>>, vector<8x32xf32>
    %c0_1 = arith.constant 0 : index
    %c0_2 = arith.constant 0 : index
    %1 = vector.load %arg2[%c0_1, %c0_2] : memref<32x32xf32, #tpu.memory_space<vmem>>, vector<32x32xf32>
    %cst = arith.constant dense<0.000000e+00> : vector<8x32xf32>
    %2 = tpu.matmul %0, %1, %cst {dimension_numbers = #tpu.dot_dimension_numbers<[1], [0], [0], [1], [0, 0, 1, 1], [], []>} : vector<8x32xf32>, vector<32x32xf32>, vector<8x32xf32> -> vector<8x32xf32>
    %c0_3 = arith.constant 0 : index
    %c0_4 = arith.constant 0 : index
    %3 = vector.load %arg3[%c0_3, %c0_4] : memref<1x32xf32, #tpu.memory_space<vmem>>, vector<1x32xf32>
    %4 = vector.broadcast %3 : vector<1x32xf32> to vector<8x32xf32>
    %5 = arith.addf %2, %4 : vector<8x32xf32>
    %cst_5 = arith.constant 0.000000e+00 : f32
    %6 = vector.broadcast %cst_5 : f32 to vector<8x32xf32>
    %7 = arith.cmpf ogt, %5, %6 : vector<8x32xf32>
    %cst_6 = arith.constant 0.00999999977 : f32
    %8 = vector.broadcast %cst_6 : f32 to vector<8x32xf32>
    %9 = arith.mulf %8, %5 : vector<8x32xf32>
    %10 = arith.select %7, %5, %9 : vector<8x32xi1>, vector<8x32xf32>
    %c0_7 = arith.constant 0 : index
    %c0_8 = arith.constant 0 : index
    %11 = vector.load %arg7[%c0_7, %c0_8] : memref<8x32xf32, #tpu.memory_space<vmem>>, vector<8x32xf32>
    tpu.vector_store %arg7[%c0_7, %c0_8], %10 {strides = array<i32>} : memref<8x32xf32, #tpu.memory_space<vmem>>, vector<8x32xf32>,
    %c0_9 = arith.constant 0 : index
    %c0_10 = arith.constant 0 : index
    %12 = vector.load %arg4[%c0_9, %c0_10] : memref<1x32xf32, #tpu.memory_space<vmem>>, vector<1x32xf32>
    %13 = vector.broadcast %12 : vector<1x32xf32> to vector<8x32xf32>
    %14 = arith.mulf %10, %13 : vector<8x32xf32>
    %cst_11 = arith.constant dense<0.000000e+00> : vector<8xf32>
    %15 = vector.multi_reduction <add>, %14, %cst_11 [1] : vector<8x32xf32> to vector<8xf32>
    %16 = vector.shape_cast %15 : vector<8xf32> to vector<8x1xf32>
    %c0_12 = arith.constant 0 : index
    %c0_13 = arith.constant 0 : index
    %17 = memref.load %arg5[%c0_12, %c0_13] : memref<1x1xf32, #tpu.memory_space<smem>>
    %18 = vector.broadcast %17 : f32 to vector<8x1xf32>
    %19 = arith.addf %16, %18 : vector<8x1xf32>
    %cst_14 = arith.constant 0.000000e+00 : f32
    %20 = vector.broadcast %cst_14 : f32 to vector<8x1xf32>
    %21 = arith.cmpf ogt, %19, %20 : vector<8x1xf32>
    %cst_15 = arith.constant 0.00999999977 : f32
    %22 = vector.broadcast %cst_15 : f32 to vector<8x1xf32>
    %23 = arith.mulf %22, %19 : vector<8x1xf32>
    %24 = arith.select %21, %19, %23 : vector<8x1xi1>, vector<8x1xf32>
    %c0_16 = arith.constant 0 : index
    %c0_17 = arith.constant 0 : index
    %25 = vector.load %arg6[%c0_16, %c0_17] : memref<8x1xf32, #tpu.memory_space<vmem>>, vector<8x1xf32>
    tpu.vector_store %arg6[%c0_16, %c0_17], %24 {strides = array<i32>} : memref<8x1xf32, #tpu.memory_space<vmem>>, vector<8x1xf32>,
    return
  }
  func.func @transform_0(%arg0: i32) -> (i32, i32) {
    %c0_i32 = arith.constant 0 : i32
    %c0_i32_0 = arith.constant 0 : i32
    return %arg0, %c0_i32 : i32, i32
  }
  func.func @transform_1(%arg0: i32) -> (i32, i32) {
    %c0_i32 = arith.constant 0 : i32
    %c0_i32_0 = arith.constant 0 : i32
    %c0_i32_1 = arith.constant 0 : i32
    return %c0_i32, %c0_i32_0 : i32, i32
  }
  func.func @transform_2(%arg0: i32) -> (i32, i32) {
    %c0_i32 = arith.constant 0 : i32
    %c0_i32_0 = arith.constant 0 : i32
    %c0_i32_1 = arith.constant 0 : i32
    return %c0_i32, %c0_i32_0 : i32, i32
  }
  func.func @transform_3(%arg0: i32) -> (i32, i32) {
    %c0_i32 = arith.constant 0 : i32
    %c0_i32_0 = arith.constant 0 : i32
    %c0_i32_1 = arith.constant 0 : i32
    return %c0_i32, %c0_i32_0 : i32, i32
  }
  func.func @transform_4(%arg0: i32) -> (i32, i32) {
    %c0_i32 = arith.constant 0 : i32
    %c0_i32_0 = arith.constant 0 : i32
    %c0_i32_1 = arith.constant 0 : i32
    return %c0_i32, %c0_i32_0 : i32, i32
  }
  func.func @transform_5(%arg0: i32) -> (i32, i32) {
    %c0_i32 = arith.constant 0 : i32
    %c0_i32_0 = arith.constant 0 : i32
    return %arg0, %c0_i32 : i32, i32
  }
  func.func @transform_6(%arg0: i32) -> (i32, i32) {
    %c0_i32 = arith.constant 0 : i32
    %c0_i32_0 = arith.constant 0 : i32
    return %arg0, %c0_i32 : i32, i32
  }
}

</mosaic_0001>

<bundles_post_ra>
// kernel: tpu_custom_call.1
= control target key start
LH: loop header
LB: loop body
LE: loop exit
PB: predicated region body
PF: predicated region fallthrough
CT: control target
= control target key end

     0   :  { %13 = vsyncpa [#allocation4], 0  ;;  %s334_s0 = inlined_call_operand.hbm [shape: f32[8,32], index: 0, kind: input, shape index: {}]   ;;  %s335_s1 = inlined_call_operand.hbm [shape: f32[32,32], index: 1, kind: input, shape index: {}]   ;;  %s336_s2 = inlined_call_operand.vmem [shape: f32[1,32], index: 2, kind: input, shape index: {}]   ;;  %s337_s3 = inlined_call_operand.vmem [shape: f32[1,32], index: 3, kind: input, shape index: {}]   ;;  %s338_s4 = inlined_call_operand.<no memory space> [shape: f32[1,1], index: 4, kind: input, shape index: {}]   ;;  %s339_s5 = inlined_call_operand.vmem [shape: f32[8,1], index: 5, kind: output, shape index: {0}]   ;;  %s340_s6 = inlined_call_operand.hbm [shape: f32[8,32], index: 6, kind: output, shape index: {1}]  }
   0x1   :  { %14 = vsyncpa [#allocation7], 0 }
   0x2   :  { %15 = vsyncpa [#allocation5], 0  ;;  %s271_s21 = smov [#allocation3]   ;;  %s272_s23 = smov [#allocation6]  }
   0x3   :  { %s22_s22 = sshll.u32 %s271_s21, 4  ;;  %s31_s24 = sshll.u32 %s272_s23, 4  ;;  %s23_s22 = int_to_ptr.vmem [resolvable:$true] %s22_s22  ;;  %s32_s24 = int_to_ptr.vmem [resolvable:$true] %s31_s24 }
   0x4   :  { %s213_s25 = scalar_lea.vmem %s23_s22, 128  ;;  %p218_p1 = scmp.lt.s32.totalorder %s23_s22, %s23_s22 }
   0x5   :  { %p214_p0 = scmp.ne.s32.totalorder %s23_s22, %s213_s25  ;;  %p219_p2 = scmp.lt.s32.totalorder %s213_s25, %s213_s25 }
   0x7   :  { %p220_p3 = por %p219_p2, %p218_p1 }
   0x9   :  { %p221_p4 = pnand %p220_p3, %p214_p0 }
   0xb   :  { %224 = shalt.err (!%p221_p4)
}
   0xc   :  { %25 = dma.hbm_to_vmem [thread:$0]  %s334_s0, 128, %s23_s22, [#allocation4]  }
   0xd   :  { %s233_s28 = scalar_lea.vmem %s32_s24, 512  ;;  %p238_p6 = scmp.lt.s32.totalorder %s32_s24, %s32_s24 }
   0xe   :  { %p234_p5 = scmp.ne.s32.totalorder %s32_s24, %s233_s28  ;;  %p239_p7 = scmp.lt.s32.totalorder %s233_s28, %s233_s28 }
  0x10   :  { %p240_p8 = por %p239_p7, %p238_p6 }
  0x12   :  { %p241_p9 = pnand %p240_p8, %p234_p5 }
  0x14   :  { %244 = shalt.err (!%p241_p9)
}
  0x15   :  { %s273_s29 = smov 128   ;;  %s274_s30 = smov 8  }
  0x16   :  { %37 = dma.hbm_to_vmem [thread:$0]  %s335_s1, 512, %s32_s24, [#allocation7], %s273_s29, %s273_s29, %s274_s30  }
  0x17   :  { %265 = dma.done.wait [#allocation4], 128  }
  0x18   :  { %266 = vsyncadd [#allocation4], 4294967168 }
  0x19   :  { %267 = dma.done.wait [#allocation7], 512  }
  0x1a   :  { %268 = vsyncadd [#allocation7], 4294966784  ;;  %v275_v0 = vmov 0.0   ;;  %vm276_vm0 = vmmov 0   ;;  %v54_v1 = vld [vmem:[#allocation6 + $0x18] sm:$0xff]  ;;  %v53_v2 = vld [vmem:[#allocation6 + $0x10] sm:$0xff] }
  0x1b   :  { %187 = vmatprep.subr.mxu0 %v275_v0  ;;  %195 = vmatprep.mubr.msk.f32.mxu0 %vm276_vm0, %v275_v0  ;;  %v52_v3 = vld [vmem:[#allocation6 + $0x8] sm:$0xff]  ;;  %v51_v4 = vld [vmem:[#allocation6] sm:$0xff]  ;;  %v50_v5 = vld [vmem:[#allocation3] sm:$0xff]  ;;  %vm62_vm1 = vcmask 261120   ;;  %s277_s11 = smov [#allocation8]  }
  0x1c   :  { %188 = vmatpush3.msra.mxu0 %v54_v1  ;;  %v179_v6 = vld [vmem:[%s336_s2] ss:$0 sm:$0xff]  ;;  %s167_s12 = sshll.u32 %s277_s11, 4  ;;  %s168_s12 = int_to_ptr.vmem [resolvable:$true] %s167_s12 }
  0x1d   :  { %189 = vmatprep.subr.mxu0 %v275_v0  ;;  %v181_v11 = vld [vmem:[%s337_s3] ss:$0 sm:$0xff]  ;;  %s245_s13 = scalar_lea.vmem %s168_s12, 128  ;;  %p250_p11 = scmp.lt.s32.totalorder %s168_s12, %s168_s12 }
  0x1e   :  { %190 = vmatpush3.msra.mxu0 %v53_v2  ;;  %p246_p10 = scmp.ne.s32.totalorder %s168_s12, %s245_s13  ;;  %p251_p12 = scmp.lt.s32.totalorder %s245_s13, %s245_s13 }
  0x1f   :  { %191 = vmatprep.subr.mxu0 %v275_v0 }
  0x20   :  { %192 = vmatpush3.msra.mxu0 %v52_v3  ;;  %p252_p13 = por %p251_p12, %p250_p11 }
  0x21   :  { %193 = vmatprep.subr.mxu0 %v275_v0 }
  0x22   :  { %194 = vmatpush3.msra.mxu0 %v51_v4  ;;  %p253_p0 = pnand %p252_p13, %p246_p10 }
  0x23   :  { %196 = vmatmul.mubr.msk.f32.vlgmr.msra.gmra.mxu0 %vm62_vm1, %v50_v5 }
  0xe3   :  { %v132_v7 = vpop.f32.mrf.mxu0 }
  0xe4   :  { %v133_v8 = vadd.f32 %v179_v6, %v132_v7 }
  0xe5   :  { %v197_v9 = vpop.f32.mrf.mxu0 }
  0xe6   :  { %v137_v10 = vmul.f32 0.01, %v133_v8  ;;  %vm136_vm2 = vcmp.gt.f32.partialorder %v133_v8, 0.0 }
  0xe8   :  { %v138_v12 = vsel %vm136_vm2, %v133_v8, %v137_v10 }
  0xe9   :  { %v147_v13 = vmul.f32 %v181_v11, %v138_v12  ;;  %139 = vst.msk [vmem:[#allocation8] sm:$0xff] %vm62_vm1, %v138_v12 }
  0xeb   :  { %v148_v14 = vsel %vm62_vm1, %v147_v13, 0.0 }
  0xec   :  { %149 = vadd.xlane.f32.xlu0 %v148_v14 }
  0xed   :  { %256 = shalt.err (!%p253_p0)
}
  0xee   :  { %170 = dma.vmem_to_hbm [thread:$0]  %s168_s12, 128, %s340_s6, [#allocation5]   ;;  %v152_v15 = vstv %s338_s4  ;;  %vm157_vm4 = vcmask 7168  }
 0x175   :  { %v150_v16 = vpop.xlane.xlu0 %149 }
 0x176   :  { %v153_v17 = vadd.f32 %v152_v15, %v150_v16 }
 0x178   :  { %vm154_vm3 = vcmp.gt.f32.partialorder %v153_v17, 0.0  ;;  %v155_v18 = vmul.f32 0.01, %v153_v17 }
 0x17a   :  { %v156_v19 = vsel %vm154_vm3, %v153_v17, %v155_v18 }
 0x17b   :  { %158 = vst.msk [vmem:[%s339_s5] sm:$0xff] %vm157_vm4, %v156_v19 }
 0x17c   :  { %269 = dma.done.wait [#allocation5], 128  }
 0x17d   :  { %270 = vsyncadd [#allocation5], 4294967168 }
 0x17e   :  { %176 = vsyncpa [#allocation4], 1 }
 0x17f   :  { %177 = vsyncpa [#allocation7], 1 }
 0x180   :  { %178 = vsyncpa [#allocation5], 1 }

</bundles_post_ra>
